<compile_context>
chip_gen: v5e
topology: v5e:2x2
jax: 0.10.0
libtpu: 0.0.40
codegen_flags: <defaults>
</compile_context>

<pallas_src>
import math
from functools import partial

import jax
import jax.numpy as jnp
from jax.experimental import pallas as pl
from jax.experimental.pallas import tpu as pltpu


# ---------------------------------------------------------------------------
# helpers
# ---------------------------------------------------------------------------
def _pick_tile(total: int, preferred: int) -> int:
    """Largest tile <= preferred that divides `total` and is a multiple of 8,
    falling back to the full extent (which always satisfies the (8,128) rule)."""
    if total <= preferred:
        return total
    start = preferred - (preferred % 8)
    for t in range(start, 7, -8):
        if total % t == 0:
            return t
    return total


def _compiler_params(dims, block_bytes: int) -> pltpu.CompilerParams:
    # Explicit scoped-VMEM limit with headroom, capped under v7x's 64 MiB.
    est = 3 * int(block_bytes) + (4 << 20)
    vmem = int(min(max(est, 16 << 20), 48 << 20))
    return pltpu.CompilerParams(dimension_semantics=dims, vmem_limit_bytes=vmem)


# ---------------------------------------------------------------------------
# linear kernel: y = x @ W + b, tiled over rows (used for fused QKV and for
# the output projection)
# ---------------------------------------------------------------------------
def _linear_kernel(x_ref, w_ref, b_ref, o_ref):
    acc = jnp.dot(x_ref[...], w_ref[...], preferred_element_type=jnp.float32)
    o_ref[...] = (acc + b_ref[...]).astype(o_ref.dtype)


def _linear(x2d, w, b2d, *, out_dtype):
    rows, e_in = x2d.shape
    e_out = w.shape[1]
    tm = _pick_tile(rows, 256)
    grid = (rows // tm,)

    itemsize = jnp.dtype(x2d.dtype).itemsize
    block_bytes = (tm * e_in + e_in * e_out + e_out) * itemsize + tm * e_out * 4
    cost = pl.CostEstimate(
        flops=2 * rows * e_in * e_out,
        transcendentals=0,
        bytes_accessed=(rows * e_in + e_in * e_out + e_out) * itemsize
        + rows * e_out * jnp.dtype(out_dtype).itemsize,
    )

    return pl.pallas_call(
        _linear_kernel,
        out_shape=jax.ShapeDtypeStruct((rows, e_out), out_dtype),
        grid_spec=pltpu.PrefetchScalarGridSpec(
            num_scalar_prefetch=0,
            grid=grid,
            in_specs=[
                pl.BlockSpec((tm, e_in), lambda i: (i, 0)),
                # Weight / bias have constant index_maps (grid-invariant); if
                # VMEM-tight, give them pipeline_mode=pl.Buffered(1).
                pl.BlockSpec((e_in, e_out), lambda i: (0, 0)),
                pl.BlockSpec((1, e_out), lambda i: (0, 0)),
            ],
            out_specs=pl.BlockSpec((tm, e_out), lambda i: (i, 0)),
        ),
        compiler_params=_compiler_params(("parallel",), block_bytes),
        cost_estimate=cost,
    )(x2d, w, b2d)


# ---------------------------------------------------------------------------
# attention core kernel: one (batch, query-tile) grid step, batched over heads
# ---------------------------------------------------------------------------
def _attention_kernel(q_ref, k_ref, v_ref, o_ref, *, inv_scale, approx_recip):
    q = q_ref[0]                      # (H, TQ, D)
    k = k_ref[0]                      # (H, N,  D)
    v = v_ref[0]                      # (H, N,  D)

    # energy = einsum('bhqd,bhkd->bhqk') for this batch element: the batched
    # dot_general contracts on the last axis of BOTH operands -> no kh.T.
    energy = jnp.einsum("hqd,hkd->hqk", q, k,
                        preferred_element_type=jnp.float32)      # (H, TQ, N)

    # Module semantics: softmax FIRST, then divide by sqrt(emb_size).
    # Elementwise softmax math stays in f32 (v5e has no bf16 VPU/EUP path).
    m = jnp.max(energy, axis=-1, keepdims=True)
    e = jnp.exp(energy - m)
    denom = jnp.sum(e, axis=-1, keepdims=True)
    att = e * (pl.reciprocal(denom, approx=approx_recip) * inv_scale)
    # dropout(p=0) is the identity.

    ctx = jnp.einsum("hqk,hkd->hqd", att.astype(v.dtype), v,
                     preferred_element_type=jnp.float32)          # (H, TQ, D)
    o_ref[0] = ctx.astype(o_ref.dtype)


# ---------------------------------------------------------------------------
# wrapper
# ---------------------------------------------------------------------------
def multi_head_attention(x, params, *, num_heads: int, compute_dtype=jnp.float32):
    """x: (B, N, E).  params: PyTorch-style Linear weights (out,in) / biases (out,).
    compute_dtype=jnp.bfloat16 runs the MXU matmuls in bf16 (f32 accumulation);
    softmax math is always f32."""
    B, N, E = x.shape
    assert E % num_heads == 0
    H = num_heads
    D = E // H
    compute_dtype = jnp.dtype(compute_dtype)

    # ---- fused QKV projection: single (E, 3E) weight, single matmul ----
    wqkv = jnp.concatenate(
        [params["wq"].T, params["wk"].T, params["wv"].T], axis=1
    ).astype(compute_dtype)                                        # (E, 3E)
    bqkv = jnp.concatenate(
        [params["bq"], params["bk"], params["bv"]]
    ).reshape(1, 3 * E).astype(jnp.float32)                        # bias stays f32

    x2d = x.reshape(B * N, E).astype(compute_dtype)
    qkv = _linear(x2d, wqkv, bqkv, out_dtype=compute_dtype)        # (B*N, 3E)

    # Host-side layout plumbing only (no compute): split heads.
    qkv = qkv.reshape(B, N, 3, H, D)
    q = qkv[:, :, 0].transpose(0, 2, 1, 3)                         # (B, H, N, D)
    k = qkv[:, :, 1].transpose(0, 2, 1, 3)
    v = qkv[:, :, 2].transpose(0, 2, 1, 3)

    # ---- attention core: grid (B, query tiles), batched over heads ----
    tq = _pick_tile(N, 128)
    grid = (B, N // tq)
    inv_scale = 1.0 / (E ** 0.5)
    approx_recip = compute_dtype == jnp.dtype(jnp.bfloat16)

    itemsize = compute_dtype.itemsize
    block_bytes = (2 * H * tq * D + 2 * H * N * D) * itemsize + H * tq * N * 4
    cost = pl.CostEstimate(
        flops=4 * B * H * N * N * D,
        transcendentals=B * H * N * N,
        bytes_accessed=4 * B * H * N * D * itemsize,
    )

    kernel = partial(_attention_kernel, inv_scale=inv_scale,
                     approx_recip=approx_recip)

    ctx = pl.pallas_call(
        kernel,
        out_shape=jax.ShapeDtypeStruct((B, H, N, D), compute_dtype),
        grid_spec=pltpu.PrefetchScalarGridSpec(
            num_scalar_prefetch=0,
            grid=grid,
            in_specs=[
                pl.BlockSpec((1, H, tq, D), lambda b, qi: (b, 0, qi, 0)),  # q tile
                pl.BlockSpec((1, H, N, D), lambda b, qi: (b, 0, 0, 0)),    # k (full)
                pl.BlockSpec((1, H, N, D), lambda b, qi: (b, 0, 0, 0)),    # v (full)
            ],
            out_specs=pl.BlockSpec((1, H, tq, D), lambda b, qi: (b, 0, qi, 0)),
        ),
        # Two parallel axes -> shards across both v7x TensorCores even at B=1.
        compiler_params=_compiler_params(("parallel", "parallel"), block_bytes),
        cost_estimate=cost,
    )(q, k, v)

    # 'b h n d -> b n (h d)' (host-side), then lane-dense output projection.
    ctx2d = ctx.transpose(0, 2, 1, 3).reshape(B * N, E).astype(compute_dtype)
    wp = params["wp"].T.astype(compute_dtype)
    bp = params["bp"].reshape(1, E).astype(jnp.float32)
    out = _linear(ctx2d, wp, bp, out_dtype=jnp.float32)            # (B*N, E)
    return out.reshape(B, N, E)


# ---------------------------------------------------------------------------
# pure-JAX reference reproducing the PyTorch forward exactly
# ---------------------------------------------------------------------------
def mha_reference(x, params, *, num_heads: int):
    B, N, E = x.shape
    D = E // num_heads

    def lin(x, w, b):  # PyTorch Linear: x @ W.T + b
        return x @ w.T + b

    q = lin(x, params["wq"], params["bq"]).reshape(B, N, num_heads, D).transpose(0, 2, 1, 3)
    k = lin(x, params["wk"], params["bk"]).reshape(B, N, num_heads, D).transpose(0, 2, 1, 3)
    v = lin(x, params["wv"], params["bv"]).reshape(B, N, num_heads, D).transpose(0, 2, 1, 3)
    energy = jnp.einsum("bhqd,bhkd->bhqk", q, k)
    att = jax.nn.softmax(energy, axis=-1) / (E ** 0.5)
    out = jnp.einsum("bhal,bhlv->bhav", att, v)
    out = out.transpose(0, 2, 1, 3).reshape(B, N, E)
    return lin(out, params["wp"], params["bp"])


if __name__ == "__main__":
    # Shapes consistent with the module defaults: emb_size=10, num_heads=5.
    B, N, E, H = 2, 8, 10, 5

    key = jax.random.PRNGKey(0)
    keys = jax.random.split(key, 9)

    bound = 1.0 / math.sqrt(E)
    params = {
        "wq": jax.random.uniform(keys[0], (E, E), jnp.float32, -bound, bound),
        "bq": jax.random.uniform(keys[1], (E,),   jnp.float32, -bound, bound),
        "wk": jax.random.uniform(keys[2], (E, E), jnp.float32, -bound, bound),
        "bk": jax.random.uniform(keys[3], (E,),   jnp.float32, -bound, bound),
        "wv": jax.random.uniform(keys[4], (E, E), jnp.float32, -bound, bound),
        "bv": jax.random.uniform(keys[5], (E,),   jnp.float32, -bound, bound),
        "wp": jax.random.uniform(keys[6], (E, E), jnp.float32, -bound, bound),
        "bp": jax.random.uniform(keys[7], (E,),   jnp.float32, -bound, bound),
    }
    x = jax.random.normal(keys[8], (B, N, E), jnp.float32)

    ref = mha_reference(x, params, num_heads=H)

    # f32 path: exact semantics, tight tolerance.
    out = multi_head_attention(x, params, num_heads=H)
    out = jax.block_until_ready(out)
    assert out.shape == (B, N, E)
    assert jnp.allclose(out, ref, atol=1e-5, rtol=1e-5), \
        f"f32 max abs err {jnp.max(jnp.abs(out - ref))}"

    # bf16 MXU path (recommended on v6e/v7x): smoke-check with loose tolerance.
    out_bf16 = multi_head_attention(x, params, num_heads=H,
                                    compute_dtype=jnp.bfloat16)
    out_bf16 = jax.block_until_ready(out_bf16)
    assert jnp.allclose(out_bf16, ref, atol=5e-2, rtol=5e-2), \
        f"bf16 max abs err {jnp.max(jnp.abs(out_bf16 - ref))}"

    print("KERNEL_OK")
</pallas_src>

<mosaic_0001>
module attributes {stable_mosaic.version = 11 : i64} {
  func.func @_linear_kernel(%arg0: i32, %arg1: memref<16x10xf32, #tpu.memory_space<vmem>>, %arg2: memref<10x30xf32, #tpu.memory_space<vmem>>, %arg3: memref<1x30xf32, #tpu.memory_space<vmem>>, %arg4: memref<16x30xf32, #tpu.memory_space<vmem>>) attributes {dimension_semantics = [#tpu.dimension_semantics<parallel>], iteration_bounds = array<i64: 1>, scalar_prefetch = 0 : i64, scratch_operands = 0 : i64, tpu.core_type = #tpu.core_type<tc>, window_params = [{transform_indices = @transform_0, window_bounds = array<i64: 16, 10>}, {pipeline_mode = #tpu.pipeline_mode<synchronous>, transform_indices = @transform_1, window_bounds = array<i64: 10, 30>}, {pipeline_mode = #tpu.pipeline_mode<synchronous>, transform_indices = @transform_2, window_bounds = array<i64: 1, 30>}, {transform_indices = @transform_3, window_bounds = array<i64: 16, 30>}]} {
    %c0 = arith.constant 0 : index
    %c0_0 = arith.constant 0 : index
    %0 = vector.load %arg1[%c0, %c0_0] : memref<16x10xf32, #tpu.memory_space<vmem>>, vector<16x10xf32>
    %c0_1 = arith.constant 0 : index
    %c0_2 = arith.constant 0 : index
    %1 = vector.load %arg2[%c0_1, %c0_2] : memref<10x30xf32, #tpu.memory_space<vmem>>, vector<10x30xf32>
    %cst = arith.constant dense<0.000000e+00> : vector<16x30xf32>
    %2 = tpu.matmul %0, %1, %cst {dimension_numbers = #tpu.dot_dimension_numbers<[1], [0], [0], [1], [0, 0, 1, 1], [], []>} : vector<16x10xf32>, vector<10x30xf32>, vector<16x30xf32> -> vector<16x30xf32>
    %c0_3 = arith.constant 0 : index
    %c0_4 = arith.constant 0 : index
    %3 = vector.load %arg3[%c0_3, %c0_4] : memref<1x30xf32, #tpu.memory_space<vmem>>, vector<1x30xf32>
    %4 = vector.broadcast %3 : vector<1x30xf32> to vector<16x30xf32>
    %5 = arith.addf %2, %4 : vector<16x30xf32>
    %c0_5 = arith.constant 0 : index
    %c0_6 = arith.constant 0 : index
    %6 = vector.load %arg4[%c0_5, %c0_6] : memref<16x30xf32, #tpu.memory_space<vmem>>, vector<16x30xf32>
    tpu.vector_store %arg4[%c0_5, %c0_6], %5 {strides = array<i32>} : memref<16x30xf32, #tpu.memory_space<vmem>>, vector<16x30xf32>,
    return
  }
  func.func @transform_0(%arg0: i32) -> (i32, i32) {
    %c0_i32 = arith.constant 0 : i32
    %c0_i32_0 = arith.constant 0 : i32
    return %arg0, %c0_i32 : i32, i32
  }
  func.func @transform_1(%arg0: i32) -> (i32, i32) {
    %c0_i32 = arith.constant 0 : i32
    %c0_i32_0 = arith.constant 0 : i32
    %c0_i32_1 = arith.constant 0 : i32
    return %c0_i32, %c0_i32_0 : i32, i32
  }
  func.func @transform_2(%arg0: i32) -> (i32, i32) {
    %c0_i32 = arith.constant 0 : i32
    %c0_i32_0 = arith.constant 0 : i32
    %c0_i32_1 = arith.constant 0 : i32
    return %c0_i32, %c0_i32_0 : i32, i32
  }
  func.func @transform_3(%arg0: i32) -> (i32, i32) {
    %c0_i32 = arith.constant 0 : i32
    %c0_i32_0 = arith.constant 0 : i32
    return %arg0, %c0_i32 : i32, i32
  }
}

</mosaic_0001>

<bundles_post_ra>
// kernel: tpu_custom_call.1
= control target key start
LH: loop header
LB: loop body
LE: loop exit
PB: predicated region body
PF: predicated region fallthrough
CT: control target
= control target key end

     0   :  { %8 = vsyncpa [#allocation3], 0  ;;  %s247_s0 = inlined_call_operand.hbm [shape: f32[16,10], index: 0, kind: input, shape index: {}]   ;;  %s248_s1 = inlined_call_operand.hbm [shape: f32[10,30], index: 1, kind: input, shape index: {}]   ;;  %s249_s2 = inlined_call_operand.vmem [shape: f32[1,30], index: 2, kind: input, shape index: {}]   ;;  %s250_s3 = inlined_call_operand.hbm [shape: f32[16,30], index: 3, kind: output, shape index: {}]  }
   0x1   :  { %9 = vsyncpa [#allocation6], 0 }
   0x2   :  { %10 = vsyncpa [#allocation4], 0  ;;  %s15_s14 = sshll.u32 %s247_s0, 4  ;;  %s201_s15 = smov [#allocation2]   ;;  %s16_s14 = int_to_ptr.hbm [resolvable:$true] %s15_s14 }
   0x3   :  { %s17_s16 = sshll.u32 %s201_s15, 4  ;;  %s28_s19 = sshll.u32 %s248_s1, 4  ;;  %s18_s16 = int_to_ptr.vmem [resolvable:$true] %s17_s16  ;;  %s29_s19 = int_to_ptr.hbm [resolvable:$true] %s28_s19 }
   0x4   :  { %s202_s20 = smov 128   ;;  %s203_s21 = smov 8  }
   0x5   :  { %23 = dma.hbm_to_vmem [thread:$0]  %s16_s14, 256, %s18_s16, [#allocation3], %s202_s20, %s202_s20, %s203_s21  }
   0x6   :  { %s204_s22 = smov [#allocation5]  }
   0x7   :  { %s30_s23 = sshll.u32 %s204_s22, 4  ;;  %s31_s23 = int_to_ptr.vmem [resolvable:$true] %s30_s23 }
   0x8   :  { %36 = dma.hbm_to_vmem [thread:$0]  %s29_s19, 256, %s31_s23, [#allocation6], %s202_s20, %s202_s20, %s203_s21  }
   0x9   :  { %195 = dma.done.wait [#allocation3], 256  }
   0xa   :  { %196 = vsyncadd [#allocation3], 4294967040 }
   0xb   :  { %197 = dma.done.wait [#allocation6], 256  }
   0xc   :  { %198 = vsyncadd [#allocation6], 4294967040  ;;  %vm62_vm0 = vcmask 1041408   ;;  %v50_v0 = vld [vmem:[#allocation5 + $0x8] sm:$0x3]  ;;  %v49_v1 = vld [vmem:[#allocation5] sm:$0xff] }
   0xd   :  { %112 = vmatpush.msk.msra.mxu0 %vm62_vm0, %v50_v0  ;;  %115 = vmatpush.msk.msra.mxu1 %vm62_vm0, %v50_v0  ;;  %v47_v2 = vld [vmem:[#allocation2] sm:$0xff]  ;;  %vm55_vm1 = vcmask 80896   ;;  %v48_v3 = vld [vmem:[#allocation2 + $0x8] sm:$0xff]  ;;  %s205_s24 = smov [#allocation7]   ;;  %s98_s28 = sshll.u32 %s250_s3, 4  ;;  %vm89_vm2 = vcmask 244736   ;;  %s99_s28 = int_to_ptr.hbm [resolvable:$true] %s98_s28 }
   0xe   :  { %v122_v4 = vld [vmem:[%s249_s2] ss:$0 sm:$0xff]  ;;  %s96_s25 = sshll.u32 %s205_s24, 4  ;;  %s97_s25 = int_to_ptr.vmem [resolvable:$true] %s96_s25 }
   0xf   :  { %81 = vmatpush.msra.mxu0 %v49_v1  ;;  %116 = vmatpush.msra.mxu1 %v49_v1 }
  0x10   :  { %113 = vmatmul.msk.f32.vlgmr.msra.gmra.mxu0 %vm55_vm1, %v47_v2  ;;  %114 = vmatmul.msk.f32.vlgmr.msra.gmra.mxu1 %vm55_vm1, %v48_v3 }
  0x8d   :  { %v83_v5 = vpop.f32.mrf.mxu0  ;;  %v86_v6 = vpop.f32.mrf.mxu1 }
  0x8e   :  { %v84_v7 = vadd.f32 %v122_v4, %v83_v5  ;;  %v87_v8 = vadd.f32 %v122_v4, %v86_v6 }
  0x90   :  { %90 = vst.msk [vmem:[#allocation7] sm:$0xff] %vm89_vm2, %v84_v7 }
  0x91   :  { %91 = vst.msk [vmem:[#allocation7 + $0x8] sm:$0xff] %vm89_vm2, %v87_v8 }
  0x92   :  { %104 = dma.vmem_to_hbm [thread:$0]  %s97_s25, 256, %s99_s28, [#allocation4], %s202_s20, %s202_s20, %s203_s21  }
  0x93   :  { %199 = dma.done.wait [#allocation4], 256  }
  0x94   :  { %200 = vsyncadd [#allocation4], 4294967040 }
  0x95   :  { %109 = vsyncpa [#allocation3], 1 }
  0x96   :  { %110 = vsyncpa [#allocation6], 1 }
  0x97   :  { %111 = vsyncpa [#allocation4], 1 }

</bundles_post_ra>
